<compile_context>
chip_gen: v7x
topology: tpu7x:2x2x1
jax: 0.10.0
libtpu: 0.0.40
codegen_flags: <defaults>
</compile_context>

<pallas_src>
import functools

import jax
import jax.numpy as jnp
from jax.experimental import pallas as pl
from jax.experimental.pallas import tpu as pltpu

_LANE = 128


def _round_up(n: int, m: int) -> int:
    return (n + m - 1) // m * m


def _pad_to(a, shape):
    """Zero-pad a 2-D array up to `shape`."""
    pads = [(0, s - d) for s, d in zip(shape, a.shape)]
    if all(p == (0, 0) for p in pads):
        return a
    return jnp.pad(a, pads)


def _mlp_kernel(x_ref, w1_ref, b1_ref, w2_ref, b2_ref, w3_ref, b3_ref, o_ref):
    # Layer 1: Linear + ReLU   (MXU matmul, f32 accumulate; VPU bias+ReLU)
    h1 = jnp.dot(x_ref[...], w1_ref[...], preferred_element_type=jnp.float32)
    h1 = jnp.maximum(h1 + b1_ref[...], 0.0)
    # Layer 2: Linear + ReLU
    h2 = jnp.dot(h1, w2_ref[...], preferred_element_type=jnp.float32)
    h2 = jnp.maximum(h2 + b2_ref[...], 0.0)
    # Layer 3: Linear (logits, no activation) -- lane-dense padded output
    out = jnp.dot(h2, w3_ref[...], preferred_element_type=jnp.float32) + b3_ref[...]
    o_ref[...] = out.astype(o_ref.dtype)


@functools.partial(jax.jit, static_argnames=("block_b",))
def agent_forward(x, params, *, block_b=128):
    """Run the Agent policy MLP as a single batched Pallas kernel.

    x:      [B, input_dim] float32
    params: dict with w1 [in, 2h], b1 [1, 2h], w2 [2h, h], b2 [1, h],
            w3 [h, out], b3 [1, out]
    returns [B, out_dim] float32 logits
    """
    w1, b1 = params["w1"], params["b1"]
    w2, b2 = params["w2"], params["b2"]
    w3, b3 = params["w3"], params["b3"]

    B, in_dim = x.shape
    out_dim = w3.shape[1]

    # --- Pad feature dims to 128-lane multiples (zeros preserve semantics). ---
    h1p = _round_up(w1.shape[1], _LANE)
    h2p = _round_up(w2.shape[1], _LANE)
    outp = _round_up(out_dim, _LANE)

    w1p = _pad_to(w1, (in_dim, h1p))
    b1p = _pad_to(b1, (1, h1p))
    w2p = _pad_to(w2, (h1p, h2p))
    b2p = _pad_to(b2, (1, h2p))
    w3p = _pad_to(w3, (h2p, outp))
    b3p = _pad_to(b3, (1, outp))

    # --- Batch tiling: TB multiple of 8, pad B up so the grid divides evenly. ---
    tb = min(block_b, _round_up(B, 8))
    tb = _round_up(tb, 8)
    bp = _round_up(B, tb)
    xp = _pad_to(x, (bp, in_dim))
    grid = (bp // tb,)

    out_padded = pl.pallas_call(
        _mlp_kernel,
        out_shape=jax.ShapeDtypeStruct((bp, outp), jnp.float32),
        grid=grid,
        in_specs=[
            # x: one batch tile per grid step.
            pl.BlockSpec((tb, in_dim), lambda i: (i, 0)),
            # Weights / biases: constant block index -> stay VMEM-resident.
            pl.BlockSpec((in_dim, h1p), lambda i: (0, 0)),
            pl.BlockSpec((1, h1p), lambda i: (0, 0)),
            pl.BlockSpec((h1p, h2p), lambda i: (0, 0)),
            pl.BlockSpec((1, h2p), lambda i: (0, 0)),
            pl.BlockSpec((h2p, outp), lambda i: (0, 0)),
            pl.BlockSpec((1, outp), lambda i: (0, 0)),
        ],
        out_specs=pl.BlockSpec((tb, outp), lambda i: (i, 0)),
        compiler_params=pltpu.CompilerParams(
            dimension_semantics=("parallel",),  # shard batch tiles across TCs (v7x)
        ),
    )(xp, w1p, b1p, w2p, b2p, w3p, b3p)

    # Strip batch padding and the lane padding on the logits.
    return out_padded[:B, :out_dim]


def init_agent_params(key, input_dim, hidden_dim, out_dim):
    """Deterministic init mimicking PyTorch nn.Linear default U[-1/sqrt(fan_in), 1/sqrt(fan_in)]."""
    dims = [
        (input_dim, hidden_dim * 2),
        (hidden_dim * 2, hidden_dim),
        (hidden_dim, out_dim),
    ]
    params = {}
    for i, (fan_in, fan_out) in enumerate(dims, start=1):
        key, kw, kb = jax.random.split(key, 3)
        bound = 1.0 / jnp.sqrt(jnp.float32(fan_in))
        params[f"w{i}"] = jax.random.uniform(
            kw, (fan_in, fan_out), jnp.float32, -bound, bound
        )
        params[f"b{i}"] = jax.random.uniform(
            kb, (1, fan_out), jnp.float32, -bound, bound
        )
    return params


def agent_forward_ref(x, params):
    h1 = jnp.maximum(x @ params["w1"] + params["b1"], 0.0)
    h2 = jnp.maximum(h1 @ params["w2"] + params["b2"], 0.0)
    return h2 @ params["w3"] + params["b3"]


if __name__ == "__main__":
    # Shapes consistent with a policy-gradient agent (CartPole-like observation),
    # batched over many env steps so the fixed pallas_call overhead is amortized
    # and the parallel batch grid axis is exercised (grid = 2 tiles of 128).
    batch, input_dim, hidden_dim, out_dim = 256, 4, 32, 2

    key = jax.random.PRNGKey(0)
    key, kx = jax.random.split(key)
    x = jax.random.normal(kx, (batch, input_dim), jnp.float32)
    params = init_agent_params(key, input_dim, hidden_dim, out_dim)

    logits = agent_forward(x, params, block_b=128)
    logits = jax.block_until_ready(logits)

    ref = agent_forward_ref(x, params)
    assert logits.shape == (batch, out_dim)
    assert jnp.allclose(logits, ref, atol=1e-5, rtol=1e-5)

    # Also check a batch that is NOT a multiple of the tile (tail handling).
    x_small = x[:37]
    logits_small = jax.block_until_ready(agent_forward(x_small, params, block_b=128))
    assert logits_small.shape == (37, out_dim)
    assert jnp.allclose(logits_small, agent_forward_ref(x_small, params), atol=1e-5, rtol=1e-5)

    # TODO(synk): Agent.act's Categorical sampling / log_prob is host-side control
    # flow in the PyTorch spec and is intentionally not implemented as a kernel.
    print("KERNEL_OK")
</pallas_src>

<mosaic_0001>
module attributes {stable_mosaic.version = 11 : i64} {
  func.func @_mlp_kernel(%arg0: i32, %arg1: memref<128x4xf32, #tpu.memory_space<vmem>>, %arg2: memref<4x128xf32, #tpu.memory_space<vmem>>, %arg3: memref<1x128xf32, #tpu.memory_space<vmem>>, %arg4: memref<128x128xf32, #tpu.memory_space<vmem>>, %arg5: memref<1x128xf32, #tpu.memory_space<vmem>>, %arg6: memref<128x128xf32, #tpu.memory_space<vmem>>, %arg7: memref<1x128xf32, #tpu.memory_space<vmem>>, %arg8: memref<128x128xf32, #tpu.memory_space<vmem>>) attributes {dimension_semantics = [#tpu.dimension_semantics<parallel>], iteration_bounds = array<i64: 2>, scalar_prefetch = 0 : i64, scratch_operands = 0 : i64, tpu.core_type = #tpu.core_type<tc>, window_params = [{transform_indices = @transform_0, window_bounds = array<i64: 128, 4>}, {pipeline_mode = #tpu.pipeline_mode<synchronous>, transform_indices = @transform_1, window_bounds = array<i64: 4, 128>}, {pipeline_mode = #tpu.pipeline_mode<synchronous>, transform_indices = @transform_2, window_bounds = array<i64: 1, 128>}, {pipeline_mode = #tpu.pipeline_mode<synchronous>, transform_indices = @transform_3, window_bounds = array<i64: 128, 128>}, {pipeline_mode = #tpu.pipeline_mode<synchronous>, transform_indices = @transform_4, window_bounds = array<i64: 1, 128>}, {pipeline_mode = #tpu.pipeline_mode<synchronous>, transform_indices = @transform_5, window_bounds = array<i64: 128, 128>}, {pipeline_mode = #tpu.pipeline_mode<synchronous>, transform_indices = @transform_6, window_bounds = array<i64: 1, 128>}, {transform_indices = @transform_7, window_bounds = array<i64: 128, 128>}]} {
    %c0 = arith.constant 0 : index
    %c0_0 = arith.constant 0 : index
    %0 = vector.load %arg1[%c0, %c0_0] : memref<128x4xf32, #tpu.memory_space<vmem>>, vector<128x4xf32>
    %c0_1 = arith.constant 0 : index
    %c0_2 = arith.constant 0 : index
    %1 = vector.load %arg2[%c0_1, %c0_2] : memref<4x128xf32, #tpu.memory_space<vmem>>, vector<4x128xf32>
    %cst = arith.constant dense<0.000000e+00> : vector<128x128xf32>
    %2 = tpu.matmul %0, %1, %cst {dimension_numbers = #tpu.dot_dimension_numbers<[1], [0], [0], [1], [0, 0, 1, 1], [], []>} : vector<128x4xf32>, vector<4x128xf32>, vector<128x128xf32> -> vector<128x128xf32>
    %c0_3 = arith.constant 0 : index
    %c0_4 = arith.constant 0 : index
    %3 = vector.load %arg3[%c0_3, %c0_4] : memref<1x128xf32, #tpu.memory_space<vmem>>, vector<1x128xf32>
    %4 = vector.broadcast %3 : vector<1x128xf32> to vector<128x128xf32>
    %5 = arith.addf %2, %4 : vector<128x128xf32>
    %cst_5 = arith.constant 0.000000e+00 : f32
    %6 = vector.broadcast %cst_5 : f32 to vector<128x128xf32>
    %7 = arith.maximumf %5, %6 : vector<128x128xf32>
    %c0_6 = arith.constant 0 : index
    %c0_7 = arith.constant 0 : index
    %8 = vector.load %arg4[%c0_6, %c0_7] : memref<128x128xf32, #tpu.memory_space<vmem>>, vector<128x128xf32>
    %cst_8 = arith.constant dense<0.000000e+00> : vector<128x128xf32>
    %9 = tpu.matmul %7, %8, %cst_8 {dimension_numbers = #tpu.dot_dimension_numbers<[1], [0], [0], [1], [0, 0, 1, 1], [], []>} : vector<128x128xf32>, vector<128x128xf32>, vector<128x128xf32> -> vector<128x128xf32>
    %c0_9 = arith.constant 0 : index
    %c0_10 = arith.constant 0 : index
    %10 = vector.load %arg5[%c0_9, %c0_10] : memref<1x128xf32, #tpu.memory_space<vmem>>, vector<1x128xf32>
    %11 = vector.broadcast %10 : vector<1x128xf32> to vector<128x128xf32>
    %12 = arith.addf %9, %11 : vector<128x128xf32>
    %cst_11 = arith.constant 0.000000e+00 : f32
    %13 = vector.broadcast %cst_11 : f32 to vector<128x128xf32>
    %14 = arith.maximumf %12, %13 : vector<128x128xf32>
    %c0_12 = arith.constant 0 : index
    %c0_13 = arith.constant 0 : index
    %15 = vector.load %arg6[%c0_12, %c0_13] : memref<128x128xf32, #tpu.memory_space<vmem>>, vector<128x128xf32>
    %cst_14 = arith.constant dense<0.000000e+00> : vector<128x128xf32>
    %16 = tpu.matmul %14, %15, %cst_14 {dimension_numbers = #tpu.dot_dimension_numbers<[1], [0], [0], [1], [0, 0, 1, 1], [], []>} : vector<128x128xf32>, vector<128x128xf32>, vector<128x128xf32> -> vector<128x128xf32>
    %c0_15 = arith.constant 0 : index
    %c0_16 = arith.constant 0 : index
    %17 = vector.load %arg7[%c0_15, %c0_16] : memref<1x128xf32, #tpu.memory_space<vmem>>, vector<1x128xf32>
    %18 = vector.broadcast %17 : vector<1x128xf32> to vector<128x128xf32>
    %19 = arith.addf %16, %18 : vector<128x128xf32>
    %c0_17 = arith.constant 0 : index
    %c0_18 = arith.constant 0 : index
    %20 = vector.load %arg8[%c0_17, %c0_18] : memref<128x128xf32, #tpu.memory_space<vmem>>, vector<128x128xf32>
    tpu.vector_store %arg8[%c0_17, %c0_18], %19 {strides = array<i32>} : memref<128x128xf32, #tpu.memory_space<vmem>>, vector<128x128xf32>,
    return
  }
  func.func @transform_0(%arg0: i32) -> (i32, i32) {
    %c0_i32 = arith.constant 0 : i32
    %c0_i32_0 = arith.constant 0 : i32
    return %arg0, %c0_i32 : i32, i32
  }
  func.func @transform_1(%arg0: i32) -> (i32, i32) {
    %c0_i32 = arith.constant 0 : i32
    %c0_i32_0 = arith.constant 0 : i32
    %c0_i32_1 = arith.constant 0 : i32
    return %c0_i32, %c0_i32_0 : i32, i32
  }
  func.func @transform_2(%arg0: i32) -> (i32, i32) {
    %c0_i32 = arith.constant 0 : i32
    %c0_i32_0 = arith.constant 0 : i32
    %c0_i32_1 = arith.constant 0 : i32
    return %c0_i32, %c0_i32_0 : i32, i32
  }
  func.func @transform_3(%arg0: i32) -> (i32, i32) {
    %c0_i32 = arith.constant 0 : i32
    %c0_i32_0 = arith.constant 0 : i32
    %c0_i32_1 = arith.constant 0 : i32
    return %c0_i32, %c0_i32_0 : i32, i32
  }
  func.func @transform_4(%arg0: i32) -> (i32, i32) {
    %c0_i32 = arith.constant 0 : i32
    %c0_i32_0 = arith.constant 0 : i32
    %c0_i32_1 = arith.constant 0 : i32
    return %c0_i32, %c0_i32_0 : i32, i32
  }
  func.func @transform_5(%arg0: i32) -> (i32, i32) {
    %c0_i32 = arith.constant 0 : i32
    %c0_i32_0 = arith.constant 0 : i32
    %c0_i32_1 = arith.constant 0 : i32
    return %c0_i32, %c0_i32_0 : i32, i32
  }
  func.func @transform_6(%arg0: i32) -> (i32, i32) {
    %c0_i32 = arith.constant 0 : i32
    %c0_i32_0 = arith.constant 0 : i32
    %c0_i32_1 = arith.constant 0 : i32
    return %c0_i32, %c0_i32_0 : i32, i32
  }
  func.func @transform_7(%arg0: i32) -> (i32, i32) {
    %c0_i32 = arith.constant 0 : i32
    %c0_i32_0 = arith.constant 0 : i32
    return %arg0, %c0_i32 : i32, i32
  }
}

</mosaic_0001>

<bundles_post_ra>
// kernel: agent_forward.1
= control target key start
LH: loop header
LB: loop body
LE: loop exit
PB: predicated region body
PF: predicated region fallthrough
CT: control target
= control target key end

     0   :  { %s1314_s24 = smov 0   ;;  %s1498_s0 = inlined_call_operand.vmem [shape: f32[256,4], index: 0, kind: input, shape index: {}]   ;;  %s1499_s1 = inlined_call_operand.vmem [shape: f32[4,128], index: 1, kind: input, shape index: {}]   ;;  %s1500_s2 = inlined_call_operand.vmem [shape: f32[1,128], index: 2, kind: input, shape index: {}]   ;;  %s1501_s3 = inlined_call_operand.vmem [shape: f32[128,128], index: 3, kind: input, shape index: {}]   ;;  %s1502_s4 = inlined_call_operand.vmem [shape: f32[1,128], index: 4, kind: input, shape index: {}]   ;;  %s1503_s5 = inlined_call_operand.vmem [shape: f32[128,128], index: 5, kind: input, shape index: {}]   ;;  %s1504_s6 = inlined_call_operand.vmem [shape: f32[1,128], index: 6, kind: input, shape index: {}]   ;;  %s1505_s7 = inlined_call_operand.vmem [shape: f32[256,128], index: 7, kind: output, shape index: {}]  }
   0x1 LB: > { %s944_s25 = sadd.s32 4294967295, %s1272_s24   ;;  %p948_p0 = scmp.ge.s32.totalorder %s1272_s24, 1  ;;  %s1272_s24 = sphi %s1314_s24, %s17_s24  }
   0x2   : > { %p238_p1 = scmp.lt.s32.totalorder %s1272_s24, 3 }
   0x4   : > { %p239_p2 = pnand %p948_p0, %p238_p1 }
   0x5   : > { %v298_v0 = vld [vmem:[%s1499_s1] sm:$0xf] (!%p239_p2)  ;;  %vm355_vm0 = vcmask (!%p239_p2), 1043456   ;;  %s949_s28 = sshll.u32 (!%p239_p2), %s944_s25, 4  ;;  %v521_v2 = vld [vmem:[%s1501_s3 + $0x8] sm:$0xff] (!%p239_p2)  ;;  %v522_v3 = vld [vmem:[%s1501_s3 + $0x10] sm:$0xff] (!%p239_p2) }
   0x6   : > { %242 = sbr.rel (%p239_p2) target bundleno = 698 (0x2ba), region = 48  ;;  %v520_v1 = vld [vmem:[%s1501_s3] sm:$0xff] (!%p239_p2)  ;;  %1056 = vmatprep.subr.msk.mxu0 (!%p239_p2), %vm355_vm0, %v298_v0  ;;  %p271_p3 = scmp.lt.s32.totalorder (!%p239_p2), %s949_s28, 31  ;;  %v523_v4 = vld [vmem:[%s1501_s3 + $0x18] sm:$0xff] (!%p239_p2)  ;;  %v525_v8 = vld [vmem:[%s1501_s3 + $0x28] sm:$0xff] (!%p239_p2)  ;;  %vm306_vm1 = vcmask (!%p239_p2), 31744  }
   0x7   : > { %1057 = vmatpush3.msk.msra.mxu0 (!%p239_p2), %vm355_vm0, %v298_v0  ;;  %v1194_v5 = vpack.c.bf16 (!%p239_p2), %v521_v2, %v520_v1  ;;  %v1198_v6 = vpack.c.bf16 (!%p239_p2), %v523_v4, %v522_v3  ;;  %v524_v7 = vld [vmem:[%s1501_s3 + $0x20] sm:$0xff] (!%p239_p2)  ;;  %v526_v10 = vld [vmem:[%s1501_s3 + $0x30] sm:$0xff] (!%p239_p2)  ;;  %v527_v11 = vld [vmem:[%s1501_s3 + $0x38] sm:$0xff] (!%p239_p2) }
   0x8   : > { %v1202_v9 = vpack.c.bf16 (!%p239_p2), %v525_v8, %v524_v7  ;;  %v1206_v16 = vpack.c.bf16 (!%p239_p2), %v527_v11, %v526_v10  ;;  %v528_v18 = vld [vmem:[%s1501_s3 + $0x40] sm:$0xff] (!%p239_p2)  ;;  %v529_v19 = vld [vmem:[%s1501_s3 + $0x48] sm:$0xff] (!%p239_p2)  ;;  %v530_v23 = vld [vmem:[%s1501_s3 + $0x50] sm:$0xff] (!%p239_p2) }
   0x9   : > { %1195 = vmatprep.subr.bf16.mxu1 (!%p239_p2), %v1194_v5  ;;  %v1210_v21 = vpack.c.bf16 (!%p239_p2), %v529_v19, %v528_v18  ;;  %v531_v24 = vld [vmem:[%s1501_s3 + $0x58] sm:$0xff] (!%p239_p2)  ;;  %v532_v28 = vld [vmem:[%s1501_s3 + $0x60] sm:$0xff] (!%p239_p2)  ;;  %v533_v29 = vld [vmem:[%s1501_s3 + $0x68] sm:$0xff] (!%p239_p2) }
   0xa   : > { %1197 = vmatpush3.bf16.msra.mxu1 (!%p239_p2), %v1194_v5  ;;  %v1214_v26 = vpack.c.bf16 (!%p239_p2), %v531_v24, %v530_v23  ;;  %v1218_v31 = vpack.c.bf16 (!%p239_p2), %v533_v29, %v532_v28  ;;  %v534_v38 = vld [vmem:[%s1501_s3 + $0x70] sm:$0xff] (!%p239_p2)  ;;  %v535_v39 = vld [vmem:[%s1501_s3 + $0x78] sm:$0xff] (!%p239_p2)  ;;  %v704_v41 = vld [vmem:[%s1503_s5] sm:$0xff] (!%p239_p2) }
   0xb   : > { %1199 = vmatprep.subr.bf16.mxu1 (!%p239_p2), %v1198_v6  ;;  %v1222_v40 = vpack.c.bf16 (!%p239_p2), %v535_v39, %v534_v38  ;;  %v705_v42 = vld [vmem:[%s1503_s5 + $0x8] sm:$0xff] (!%p239_p2)  ;;  %v706_v43 = vld [vmem:[%s1503_s5 + $0x10] sm:$0xff] (!%p239_p2)  ;;  %v707_v45 = vld [vmem:[%s1503_s5 + $0x18] sm:$0xff] (!%p239_p2) }
   0xc   : > { %v1226_v44 = vpack.c.bf16 (!%p239_p2), %v705_v42, %v704_v41  ;;  %v1230_v46 = vpack.c.bf16 (!%p239_p2), %v707_v45, %v706_v43  ;;  %v708_v47 = vld [vmem:[%s1503_s5 + $0x20] sm:$0xff] (!%p239_p2)  ;;  %v709_v48 = vld [vmem:[%s1503_s5 + $0x28] sm:$0xff] (!%p239_p2)  ;;  %v710_v50 = vld [vmem:[%s1503_s5 + $0x30] sm:$0xff] (!%p239_p2) }
   0xd   : > { %s1507_s28 = smov (!%p271_p3, %s949_s28), 31  ;;  %v1234_v49 = vpack.c.bf16 %v709_v48, %v708_v47  ;;  %v711_v51 = vld [vmem:[%s1503_s5 + $0x38] sm:$0xff]  ;;  %v712_v53 = vld [vmem:[%s1503_s5 + $0x40] sm:$0xff]  ;;  %v713_v54 = vld [vmem:[%s1503_s5 + $0x48] sm:$0xff] }
   0xe   : > { %s950_s18 = sshll.u32 %s1507_s28, 3  ;;  %1201 = vmatpush3.bf16.msra.mxu1 %v1198_v6  ;;  %1227 = vmatprep.subr.bf16.mxu0 %v1226_v44  ;;  %v1238_v52 = vpack.c.bf16 %v711_v51, %v710_v50  ;;  %v1242_v55 = vpack.c.bf16 %v713_v54, %v712_v53  ;;  %v714_v56 = vld [vmem:[%s1503_s5 + $0x50] sm:$0xff]  ;;  %v715_v57 = vld [vmem:[%s1503_s5 + $0x58] sm:$0xff]  ;;  %v716_v59 = vld [vmem:[%s1503_s5 + $0x60] sm:$0xff] }
   0xf   : > { %s1351_s21 = scalar_lea.vmem %s1498_s0, %s950_s18  ;;  %1203 = vmatprep.subr.bf16.mxu1 %v1202_v9  ;;  %v1246_v58 = vpack.c.bf16 %v715_v57, %v714_v56  ;;  %v717_v60 = vld [vmem:[%s1503_s5 + $0x68] sm:$0xff]  ;;  %v953_v62 = vld [vmem:[%s1500_s2] ss:$0 sm:$0xff]  ;;  %v718_v47 = vld [vmem:[%s1503_s5 + $0x70] sm:$0xff]  ;;  %s1477_s23 = scalar_lea.vmem %s1505_s7, %s950_s18 }
  0x10   : > { %v282_v12 = vld [vmem:[%s1351_s21] sm:$0xff]  ;;  %v283_v13 = vld [vmem:[%s1351_s21 + $0x8] sm:$0xff]  ;;  %v284_v14 = vld [vmem:[%s1351_s21 + $0x10] sm:$0xff]  ;;  %v1250_v61 = vpack.c.bf16 %v717_v60, %v716_v59 }
  0x11   : > { %1058 = vmatprep.mubr.msk.f32.mxu0 %vm306_vm1, %v282_v12  ;;  %v285_v15 = vld [vmem:[%s1351_s21 + $0x18] sm:$0xff]  ;;  %v286_v17 = vld [vmem:[%s1351_s21 + $0x20] sm:$0xff]  ;;  %v287_v20 = vld [vmem:[%s1351_s21 + $0x28] sm:$0xff] }
  0x12   : > { %1059 = vmatmul.mubr.msk.f32.vlgmr.msra.gmra.mrb[0].mxu0 %vm306_vm1, %v283_v13  ;;  %1205 = vmatpush3.bf16.msra.mxu1 %v1202_v9  ;;  %v288_v22 = vld [vmem:[%s1351_s21 + $0x30] sm:$0xff]  ;;  %v289_v25 = vld [vmem:[%s1351_s21 + $0x38] sm:$0xff]  ;;  %v290_v27 = vld [vmem:[%s1351_s21 + $0x40] sm:$0xff] }
  0x13   : > { %1061 = vmatprep.mubr.msk.f32.mxu0 %vm306_vm1, %v284_v14  ;;  %1207 = vmatprep.subr.bf16.mxu1 %v1206_v16  ;;  %v291_v30 = vld [vmem:[%s1351_s21 + $0x48] sm:$0xff]  ;;  %v292_v32 = vld [vmem:[%s1351_s21 + $0x50] sm:$0xff]  ;;  %v293_v33 = vld [vmem:[%s1351_s21 + $0x58] sm:$0xff] }
  0x14   : > { %v294_v34 = vld [vmem:[%s1351_s21 + $0x60] sm:$0xff]  ;;  %v295_v35 = vld [vmem:[%s1351_s21 + $0x68] sm:$0xff]  ;;  %v296_v36 = vld [vmem:[%s1351_s21 + $0x70] sm:$0xff]  ;;  %1229 = vmatpush3.bf16.msra.mxu0 %v1226_v44 }
  0x15   : > { %v297_v37 = vld [vmem:[%s1351_s21 + $0x78] sm:$0xff]  ;;  %1231 = vmatprep.subr.bf16.mxu0 %v1230_v46  ;;  %v971_v50 = vld [vmem:[%s1502_s4] ss:$0 sm:$0xff] }
  0x16   : > { %1062 = vmatmul.mubr.msk.f32.gmra.mrb[2].mxu0 %vm306_vm1, %v285_v15  ;;  %1209 = vmatpush3.bf16.msra.mxu1 %v1206_v16  ;;  %v719_v48 = vld [vmem:[%s1503_s5 + $0x78] sm:$0xff] }
  0x17   : > { %1064 = vmatprep.mubr.msk.f32.mxu0 %vm306_vm1, %v286_v17  ;;  %1211 = vmatprep.subr.bf16.mxu1 %v1210_v21 }
  0x18   : > { %1233 = vmatpush3.bf16.msra.mxu0 %v1230_v46 }
  0x19   : > { %1235 = vmatprep.subr.bf16.mxu0 %v1234_v49 }
  0x1a   : > { %1065 = vmatmul.mubr.msk.f32.gmra.mrb[4].mxu0 %vm306_vm1, %v287_v20  ;;  %1213 = vmatpush3.bf16.msra.mxu1 %v1210_v21 }
  0x1b   : > { %1067 = vmatprep.mubr.msk.f32.mxu0 %vm306_vm1, %v288_v22  ;;  %1215 = vmatprep.subr.bf16.mxu1 %v1214_v26 }
  0x1c   : > { %1237 = vmatpush3.bf16.msra.mxu0 %v1234_v49  ;;  %v1254_v49 = vpack.c.bf16 %v719_v48, %v718_v47 }
  0x1d   : > { %1239 = vmatprep.subr.bf16.mxu0 %v1238_v52 }
  0x1e   : > { %1068 = vmatmul.mubr.msk.f32.gmra.mrb[6].mxu0 %vm306_vm1, %v289_v25  ;;  %1217 = vmatpush3.bf16.msra.mxu1 %v1214_v26 }
  0x1f   : > { %1070 = vmatprep.mubr.msk.f32.mxu0 %vm306_vm1, %v290_v27  ;;  %1219 = vmatprep.subr.bf16.mxu1 %v1218_v31 }
  0x20   : > { %1241 = vmatpush3.bf16.msra.mxu0 %v1238_v52 }
  0x21   : > { %1243 = vmatprep.subr.bf16.mxu0 %v1242_v55 }
  0x22   : > { %1071 = vmatmul.mubr.msk.f32.gmra.mrb[8].mxu0 %vm306_vm1, %v291_v30  ;;  %1221 = vmatpush3.bf16.msra.mxu1 %v1218_v31 }
  0x23   : > { %1073 = vmatprep.mubr.msk.f32.mxu0 %vm306_vm1, %v292_v32  ;;  %1223 = vmatprep.subr.bf16.mxu1 %v1222_v40 }
  0x24   : > { %1245 = vmatpush3.bf16.msra.mxu0 %v1242_v55 }
  0x25   : > { %1247 = vmatprep.subr.bf16.mxu0 %v1246_v58 }
  0x26   : > { %1074 = vmatmul.mubr.msk.f32.gmra.mrb[10].mxu0 %vm306_vm1, %v293_v33  ;;  %1225 = vmatpush3.bf16.msra.mxu1 %v1222_v40 }
  0x27   : > { %1076 = vmatprep.mubr.msk.f32.mxu0 %vm306_vm1, %v294_v34 }
  0x28   : > { %1249 = vmatpush3.bf16.msra.mxu0 %v1246_v58 }
  0x29   : > { %1251 = vmatprep.subr.bf16.mxu0 %v1250_v61 }
  0x2a   : > { %1077 = vmatmul.mubr.msk.f32.gmra.mrb[12].mxu0 %vm306_vm1, %v295_v35 }
  0x2b   : > { %1079 = vmatprep.mubr.msk.f32.mxu0 %vm306_vm1, %v296_v36 }
  0x2c   : > { %1253 = vmatpush3.bf16.msra.mxu0 %v1250_v61 }
  0x2d   : > { %1255 = vmatprep.subr.bf16.mxu0 %v1254_v49 }
  0x2e   : > { %1080 = vmatmul.mubr.msk.f32.gmra.mrb[14].mxu0 %vm306_vm1, %v297_v37 }
  0x30   : > { %1257 = vmatpush3.bf16.msra.mxu0 %v1254_v49 }
  0xe5   : > { %v1060_v63 = vpop.f32.mrb[0].mxu0 }
  0xe6   : > { %v431_v0 = vadd.f32 %v1060_v63, %v953_v62  ;;  %v425_v1 = vpop.f32.mrb[1].mxu0 }
  0xe7   : > { %v426_v2 = vadd.f32 %v953_v62, %v425_v1 }
  0xe8   : > { %v505_v5 = vmax.f32 %v431_v0, 0.0 }
  0xe9   : > { %v1063_v3 = vpop.f32.mrb[2].mxu0  ;;  %v504_v4 = vmax.f32 %v426_v2, 0.0 }
  0xea   : > { %v441_v6 = vadd.f32 %v1063_v3, %v953_v62  ;;  %v435_v7 = vpop.f32.mrb[3].mxu0 }
  0xeb   : > { %v436_v8 = vadd.f32 %v953_v62, %v435_v7  ;;  %1114 = vmatprep.mubr.f32.mxu1 %v504_v4 }
  0xec   : > { %1115 = vmatmul.mubr.f32.vlgmr.msra.gmra.mrb[0].mxu1 %v505_v5  ;;  %v507_v11 = vmax.f32 %v441_v6, 0.0 }
  0xed   : > { %v506_v9 = vmax.f32 %v436_v8, 0.0  ;;  %v1066_v10 = vpop.f32.mrb[4].mxu0 }
  0xee   : > { %v451_v12 = vadd.f32 %v1066_v10, %v953_v62  ;;  %v445_v13 = vpop.f32.mrb[5].mxu0 }
  0xef   : > { %v446_v14 = vadd.f32 %v953_v62, %v445_v13  ;;  %1117 = vmatprep.mubr.f32.mxu1 %v506_v9 }
  0xf0   : > { %1118 = vmatmul.mubr.f32.gmra.mrb[2].mxu1 %v507_v11  ;;  %v509_v17 = vmax.f32 %v451_v12, 0.0 }
  0xf1   : > { %v508_v15 = vmax.f32 %v446_v14, 0.0  ;;  %v1069_v16 = vpop.f32.mrb[6].mxu0 }
  0xf2   : > { %v461_v18 = vadd.f32 %v1069_v16, %v953_v62  ;;  %v455_v19 = vpop.f32.mrb[7].mxu0 }
  0xf3   : > { %v456_v20 = vadd.f32 %v953_v62, %v455_v19  ;;  %1120 = vmatprep.mubr.f32.mxu1 %v508_v15 }
  0xf4   : > { %1121 = vmatmul.mubr.f32.gmra.mrb[4].mxu1 %v509_v17  ;;  %v511_v23 = vmax.f32 %v461_v18, 0.0 }
  0xf5   : > { %v510_v21 = vmax.f32 %v456_v20, 0.0  ;;  %v1072_v22 = vpop.f32.mrb[8].mxu0 }
  0xf6   : > { %v471_v24 = vadd.f32 %v1072_v22, %v953_v62  ;;  %v465_v25 = vpop.f32.mrb[9].mxu0 }
  0xf7   : > { %v466_v26 = vadd.f32 %v953_v62, %v465_v25  ;;  %1123 = vmatprep.mubr.f32.mxu1 %v510_v21 }
  0xf8   : > { %1124 = vmatmul.mubr.f32.gmra.mrb[6].mxu1 %v511_v23  ;;  %v513_v29 = vmax.f32 %v471_v24, 0.0 }
  0xf9   : > { %v512_v27 = vmax.f32 %v466_v26, 0.0  ;;  %v1075_v28 = vpop.f32.mrb[10].mxu0 }
  0xfa   : > { %v481_v30 = vadd.f32 %v1075_v28, %v953_v62  ;;  %v475_v31 = vpop.f32.mrb[11].mxu0 }
  0xfb   : > { %v476_v32 = vadd.f32 %v953_v62, %v475_v31  ;;  %1126 = vmatprep.mubr.f32.mxu1 %v512_v27 }
  0xfc   : > { %1127 = vmatmul.mubr.f32.gmra.mrb[8].mxu1 %v513_v29  ;;  %v515_v35 = vmax.f32 %v481_v30, 0.0 }
  0xfd   : > { %v514_v33 = vmax.f32 %v476_v32, 0.0  ;;  %v1078_v34 = vpop.f32.mrb[12].mxu0 }
  0xfe   : > { %v491_v36 = vadd.f32 %v1078_v34, %v953_v62  ;;  %v485_v37 = vpop.f32.mrb[13].mxu0 }
  0xff   : > { %v486_v38 = vadd.f32 %v953_v62, %v485_v37  ;;  %1129 = vmatprep.mubr.f32.mxu1 %v514_v33 }
 0x100   : > { %1130 = vmatmul.mubr.f32.gmra.mrb[10].mxu1 %v515_v35  ;;  %v517_v41 = vmax.f32 %v491_v36, 0.0  ;;  %v972_v35 = vld [vmem:[%s1504_s6] ss:$0 sm:$0xff] }
 0x101   : > { %v516_v39 = vmax.f32 %v486_v38, 0.0  ;;  %v1081_v40 = vpop.f32.mrb[14].mxu0 }
 0x102   : > { %v501_v42 = vadd.f32 %v1081_v40, %v953_v62  ;;  %v495_v43 = vpop.f32.mrb[15].mxu0 }
 0x103   : > { %v496_v44 = vadd.f32 %v953_v62, %v495_v43  ;;  %1132 = vmatprep.mubr.f32.mxu1 %v516_v39 }
 0x104   : > { %1133 = vmatmul.mubr.f32.gmra.mrb[12].mxu1 %v517_v41  ;;  %v519_v46 = vmax.f32 %v501_v42, 0.0 }
 0x105   : > { %v518_v45 = vmax.f32 %v496_v44, 0.0 }
 0x107   : > { %1135 = vmatprep.mubr.f32.mxu1 %v518_v45 }
 0x108   : > { %1136 = vmatmul.mubr.f32.gmra.mrb[14].mxu1 %v519_v46 }
 0x1bf   : > { %v1116_v51 = vpop.f32.mrb[0].mxu1 }
 0x1c0   : > { %v615_v52 = vadd.f32 %v1116_v51, %v971_v50  ;;  %v609_v53 = vpop.f32.mrb[1].mxu1 }
 0x1c1   : > { %v610_v54 = vadd.f32 %v971_v50, %v609_v53 }
 0x1c2   : > { %v689_v57 = vmax.f32 %v615_v52, 0.0 }
 0x1c3   : > { %v688_v55 = vmax.f32 %v610_v54, 0.0  ;;  %v1119_v56 = vpop.f32.mrb[2].mxu1 }
 0x1c4   : > { %v625_v58 = vadd.f32 %v1119_v56, %v971_v50  ;;  %v619_v59 = vpop.f32.mrb[3].mxu1 }
 0x1c5   : > { %v620_v60 = vadd.f32 %v971_v50, %v619_v59  ;;  %1170 = vmatprep.mubr.f32.mxu0 %v688_v55 }
 0x1c6   : > { %1171 = vmatmul.mubr.f32.vlgmr.msra.gmra.mrb[16].mxu0 %v689_v57  ;;  %v691_v63 = vmax.f32 %v625_v58, 0.0 }
 0x1c7   : > { %v690_v61 = vmax.f32 %v620_v60, 0.0  ;;  %v1122_v62 = vpop.f32.mrb[4].mxu1 }
 0x1c8   : > { %v635_v0 = vadd.f32 %v1122_v62, %v971_v50  ;;  %v629_v1 = vpop.f32.mrb[5].mxu1 }
 0x1c9   : > { %v630_v2 = vadd.f32 %v971_v50, %v629_v1  ;;  %1173 = vmatprep.mubr.f32.mxu0 %v690_v61 }
 0x1ca   : > { %1174 = vmatmul.mubr.f32.gmra.mrb[18].mxu0 %v691_v63  ;;  %v693_v5 = vmax.f32 %v635_v0, 0.0 }
 0x1cb   : > { %v692_v3 = vmax.f32 %v630_v2, 0.0  ;;  %v1125_v4 = vpop.f32.mrb[6].mxu1 }
 0x1cc   : > { %v645_v6 = vadd.f32 %v1125_v4, %v971_v50  ;;  %v639_v7 = vpop.f32.mrb[7].mxu1 }
 0x1cd   : > { %v640_v8 = vadd.f32 %v971_v50, %v639_v7  ;;  %1176 = vmatprep.mubr.f32.mxu0 %v692_v3 }
 0x1ce   : > { %1177 = vmatmul.mubr.f32.gmra.mrb[20].mxu0 %v693_v5  ;;  %v695_v11 = vmax.f32 %v645_v6, 0.0 }
 0x1cf   : > { %v694_v9 = vmax.f32 %v640_v8, 0.0  ;;  %v1128_v10 = vpop.f32.mrb[8].mxu1 }
 0x1d0   : > { %v655_v12 = vadd.f32 %v1128_v10, %v971_v50  ;;  %v649_v13 = vpop.f32.mrb[9].mxu1 }
 0x1d1   : > { %v650_v14 = vadd.f32 %v971_v50, %v649_v13  ;;  %1179 = vmatprep.mubr.f32.mxu0 %v694_v9 }
 0x1d2   : > { %1180 = vmatmul.mubr.f32.gmra.mrb[22].mxu0 %v695_v11  ;;  %v697_v17 = vmax.f32 %v655_v12, 0.0 }
 0x1d3   : > { %v696_v15 = vmax.f32 %v650_v14, 0.0  ;;  %v1131_v16 = vpop.f32.mrb[10].mxu1 }
 0x1d4   : > { %v665_v18 = vadd.f32 %v1131_v16, %v971_v50  ;;  %v659_v19 = vpop.f32.mrb[11].mxu1 }
 0x1d5   : > { %v660_v20 = vadd.f32 %v971_v50, %v659_v19  ;;  %1182 = vmatprep.mubr.f32.mxu0 %v696_v15 }
 0x1d6   : > { %1183 = vmatmul.mubr.f32.gmra.mrb[24].mxu0 %v697_v17  ;;  %v699_v23 = vmax.f32 %v665_v18, 0.0 }
 0x1d7   : > { %v698_v21 = vmax.f32 %v660_v20, 0.0  ;;  %v1134_v22 = vpop.f32.mrb[12].mxu1 }
 0x1d8   : > { %v675_v24 = vadd.f32 %v1134_v22, %v971_v50  ;;  %v669_v25 = vpop.f32.mrb[13].mxu1 }
 0x1d9   : > { %v670_v26 = vadd.f32 %v971_v50, %v669_v25  ;;  %1185 = vmatprep.mubr.f32.mxu0 %v698_v21 }
 0x1da   : > { %1186 = vmatmul.mubr.f32.gmra.mrb[26].mxu0 %v699_v23  ;;  %v701_v29 = vmax.f32 %v675_v24, 0.0 }
 0x1db   : > { %v700_v27 = vmax.f32 %v670_v26, 0.0  ;;  %v1137_v28 = vpop.f32.mrb[14].mxu1 }
 0x1dc   : > { %v685_v30 = vadd.f32 %v1137_v28, %v971_v50  ;;  %v679_v31 = vpop.f32.mrb[15].mxu1 }
 0x1dd   : > { %v680_v32 = vadd.f32 %v971_v50, %v679_v31  ;;  %1188 = vmatprep.mubr.f32.mxu0 %v700_v27 }
 0x1de   : > { %1189 = vmatmul.mubr.f32.gmra.mrb[28].mxu0 %v701_v29  ;;  %v703_v34 = vmax.f32 %v685_v30, 0.0 }
 0x1df   : > { %v702_v33 = vmax.f32 %v680_v32, 0.0 }
 0x1e1   : > { %1191 = vmatprep.mubr.f32.mxu0 %v702_v33 }
 0x1e2   : > { %1192 = vmatmul.mubr.f32.gmra.mrb[30].mxu0 %v703_v34 }
 0x299   : > { %v1172_v36 = vpop.f32.mrb[16].mxu0 }
 0x29a   : > { %v799_v37 = vadd.f32 %v1172_v36, %v972_v35  ;;  %v793_v38 = vpop.f32.mrb[17].mxu0 }
 0x29b   : > { %v794_v39 = vadd.f32 %v972_v35, %v793_v38 }
 0x29c   : > { %873 = vst [vmem:[%s1477_s23 + $0x8] sm:$0xff] %v799_v37 }
 0x29d   : > { %872 = vst [vmem:[%s1477_s23] sm:$0xff] %v794_v39  ;;  %v1175_v40 = vpop.f32.mrb[18].mxu0 }
 0x29e   : > { %v809_v41 = vadd.f32 %v1175_v40, %v972_v35  ;;  %v803_v42 = vpop.f32.mrb[19].mxu0 }
 0x29f   : > { %v804_v43 = vadd.f32 %v972_v35, %v803_v42 }
 0x2a0   : > { %875 = vst [vmem:[%s1477_s23 + $0x18] sm:$0xff] %v809_v41 }
 0x2a1   : > { %874 = vst [vmem:[%s1477_s23 + $0x10] sm:$0xff] %v804_v43  ;;  %v1178_v44 = vpop.f32.mrb[20].mxu0 }
 0x2a2   : > { %v819_v45 = vadd.f32 %v1178_v44, %v972_v35  ;;  %v813_v46 = vpop.f32.mrb[21].mxu0 }
 0x2a3   : > { %v814_v47 = vadd.f32 %v972_v35, %v813_v46 }
 0x2a4   : > { %877 = vst [vmem:[%s1477_s23 + $0x28] sm:$0xff] %v819_v45 }
 0x2a5   : > { %876 = vst [vmem:[%s1477_s23 + $0x20] sm:$0xff] %v814_v47  ;;  %v1181_v48 = vpop.f32.mrb[22].mxu0 }
 0x2a6   : > { %v829_v49 = vadd.f32 %v1181_v48, %v972_v35  ;;  %v823_v50 = vpop.f32.mrb[23].mxu0 }
 0x2a7   : > { %v824_v51 = vadd.f32 %v972_v35, %v823_v50 }
 0x2a8   : > { %879 = vst [vmem:[%s1477_s23 + $0x38] sm:$0xff] %v829_v49 }
 0x2a9   : > { %878 = vst [vmem:[%s1477_s23 + $0x30] sm:$0xff] %v824_v51  ;;  %v1184_v52 = vpop.f32.mrb[24].mxu0 }
 0x2aa   : > { %v839_v53 = vadd.f32 %v1184_v52, %v972_v35  ;;  %v833_v54 = vpop.f32.mrb[25].mxu0 }
 0x2ab   : > { %v834_v55 = vadd.f32 %v972_v35, %v833_v54 }
 0x2ac   : > { %881 = vst [vmem:[%s1477_s23 + $0x48] sm:$0xff] %v839_v53 }
 0x2ad   : > { %880 = vst [vmem:[%s1477_s23 + $0x40] sm:$0xff] %v834_v55  ;;  %v1187_v56 = vpop.f32.mrb[26].mxu0 }
 0x2ae   : > { %v849_v57 = vadd.f32 %v1187_v56, %v972_v35  ;;  %v843_v58 = vpop.f32.mrb[27].mxu0 }
 0x2af   : > { %v844_v59 = vadd.f32 %v972_v35, %v843_v58 }
 0x2b0   : > { %883 = vst [vmem:[%s1477_s23 + $0x58] sm:$0xff] %v849_v57 }
 0x2b1   : > { %882 = vst [vmem:[%s1477_s23 + $0x50] sm:$0xff] %v844_v59  ;;  %v1190_v60 = vpop.f32.mrb[28].mxu0 }
 0x2b2   : > { %v859_v61 = vadd.f32 %v1190_v60, %v972_v35  ;;  %v853_v62 = vpop.f32.mrb[29].mxu0 }
 0x2b3   : > { %v854_v63 = vadd.f32 %v972_v35, %v853_v62 }
 0x2b4   : > { %885 = vst [vmem:[%s1477_s23 + $0x68] sm:$0xff] %v859_v61 }
 0x2b5   : > { %884 = vst [vmem:[%s1477_s23 + $0x60] sm:$0xff] %v854_v63  ;;  %v1193_v0 = vpop.f32.mrb[30].mxu0 }
 0x2b6   : > { %v869_v1 = vadd.f32 %v1193_v0, %v972_v35  ;;  %v863_v2 = vpop.f32.mrb[31].mxu0 }
 0x2b7   : > { %v864_v3 = vadd.f32 %v972_v35, %v863_v2 }
 0x2b8   : > { %887 = vst [vmem:[%s1477_s23 + $0x78] sm:$0xff] %v869_v1 }
 0x2b9   : > { %886 = vst [vmem:[%s1477_s23 + $0x70] sm:$0xff] %v864_v3 }
 0x2ba PF: > { %s17_s24 = sadd.s32 1, %s1272_s24  }
 0x2bb   : > { %p14_p4 = scmp.ge.s32.totalorder %s17_s24, 4  }
 0x2bd   :  { %16 = sbr.rel (!%p14_p4) target bundleno = 1 (0x1), region = 78 }

</bundles_post_ra>
